<compile_context>
chip_gen: v7x
topology: tpu7x:2x2x1
jax: 0.10.0
libtpu: 0.0.40
codegen_flags: <defaults>
</compile_context>

<pallas_src>
import functools

import jax
import jax.numpy as jnp
import numpy as np
from jax import lax
from jax.experimental import pallas as pl
from jax.experimental.pallas import tpu as pltpu


def _round_up(x, m):
    return (x + m - 1) // m * m


# ------------------------------ kernels ----------------------------------------


def _conv_stats_kernel(a_ref, w_ref, y_ref, sum_ref, ssq_ref, *, m_valid, tm):
    """y = A @ W once per row tile; stage y (bf16) and accumulate channel stats (f32).

    sum_ref / ssq_ref have a constant output block index -> they stay resident in VMEM
    across the whole row-tile axis (marked "arbitrary") and are flushed once at the end.
    """
    i = pl.program_id(0)
    nt = pl.num_programs(0)

    y = jnp.dot(a_ref[...], w_ref[...], preferred_element_type=jnp.float32)

    @pl.when(i == 0)
    def _init():
        sum_ref[...] = jnp.zeros_like(sum_ref)
        ssq_ref[...] = jnp.zeros_like(ssq_ref)

    is_tail = i == nt - 1

    @pl.when(jnp.logical_not(is_tail))
    def _acc_full():
        sum_ref[...] += jnp.sum(y, axis=0, keepdims=True)
        ssq_ref[...] += jnp.sum(y * y, axis=0, keepdims=True)

    @pl.when(is_tail)
    def _acc_tail():
        # Only the last tile can contain out-of-bounds (unspecified) rows; mask them
        # with a select (not a multiply) so garbage/NaN rows cannot pollute the stats.
        rows = lax.broadcasted_iota(jnp.int32, y.shape, 0) + i * tm
        ym = jnp.where(rows < m_valid, y, 0.0)
        sum_ref[...] += jnp.sum(ym, axis=0, keepdims=True)
        ssq_ref[...] += jnp.sum(ym * ym, axis=0, keepdims=True)

    # Stage the un-normalized conv output in bf16 (halves HBM traffic vs f32).
    y_ref[...] = y.astype(y_ref.dtype)


def _bn_lrelu_kernel(y_ref, scale_ref, shift_ref, o_ref, *, slope):
    """Epilogue: yhat = y*scale + shift, then LeakyReLU.  Runs in place over the staged y."""
    y = y_ref[...].astype(jnp.float32)
    yhat = y * scale_ref[...] + shift_ref[...]
    o_ref[...] = jnp.where(yhat >= 0, yhat, slope * yhat).astype(o_ref.dtype)


# ------------------------------ XLA fallback / reference -----------------------


def _conv_bn_lrelu_xla(x, weight, gamma, beta, *, stride, padding, eps, slope):
    y = lax.conv_general_dilated(
        x, weight, (stride, stride), [(padding, padding), (padding, padding)],
        dimension_numbers=("NCHW", "OIHW", "NCHW"))
    mu = y.mean(axis=(0, 2, 3), keepdims=True)
    var = y.var(axis=(0, 2, 3), keepdims=True)          # biased (BN train-mode)
    yn = (y - mu) * lax.rsqrt(var + eps)
    yn = gamma.reshape(1, -1, 1, 1) * yn + beta.reshape(1, -1, 1, 1)
    return jnp.where(yn >= 0, yn, slope * yn).astype(x.dtype)


# ------------------------------ wrapper -----------------------------------------


def conv_block_forward(x, weight, gamma, beta, *, stride=1, padding=0,
                       eps=1e-5, slope=0.2, tm=None, allow_xla_fallback=True):
    """ConvBlock forward (NCHW in / NCHW out), train-mode BatchNorm, LeakyReLU(0.2)."""
    n, cin, h, w_in = x.shape
    cout, _, kh, kw = weight.shape
    ho = (h + 2 * padding - kh) // stride + 1
    wo = (w_in + 2 * padding - kw) // stride + 1
    m = n * ho * wo
    k = cin * kh * kw

    # Small-problem fallback: with tiny Cout / tiny matmuls the Cout padding and
    # per-grid-step overhead make fused XLA faster than the Pallas path.
    if allow_xla_fallback and (cout < 64 or m * k * cout < (1 << 27)):
        return _conv_bn_lrelu_xla(x, weight, gamma, beta, stride=stride,
                                  padding=padding, eps=eps, slope=slope)

    out_dtype = x.dtype
    coutp = _round_up(cout, 128)

    # -- im2col via one XLA patch-extraction conv, CHANNEL-LAST so the reshape to
    #    [M, K] is layout-free (no transpose pass).  K is left unpadded and M is not
    #    padded either (tail tile is masked in-kernel) -> no extra HBM passes over A.
    #    Patch feature order is (cin, kh, kw), matching weight.reshape(cout, cin*kh*kw).
    patches = lax.conv_general_dilated_patches(
        x.astype(jnp.bfloat16), (kh, kw), (stride, stride),
        [(padding, padding), (padding, padding)],
        dimension_numbers=("NCHW", "OIHW", "NHWC"))
    a = patches.reshape(m, k)                                      # [M, K] bf16

    # Weight as [K, Coutp] bf16 (tiny; only Cout is padded, to a lane-dense multiple).
    wmat = jnp.pad(weight.reshape(cout, k).T.astype(jnp.bfloat16),
                   ((0, 0), (0, coutp - cout)))

    # -- generation-aware tile-size / VMEM-limit selection.
    try:
        vmem_cap = int(pltpu.get_tpu_info().vmem_capacity_bytes)
    except Exception:                       # conservative default (v7x: 64 MiB / TC)
        vmem_cap = 64 * 1024 * 1024
    budget = int(0.55 * vmem_cap)

    def _tile_bytes(rows):
        return (2 * rows * k * 2            # A tile, double-buffered, bf16
                + 2 * k * coutp * 2         # W (resident, still double-buffered), bf16
                + 2 * rows * coutp * 2      # staged-y tile, double-buffered, bf16
                + 8 * coutp * 4             # stats / scale / shift blocks
                + (2 << 20))                # compiler scratch headroom

    if tm is None:
        tm = 128
        for cand in (4096, 2048, 1024, 512, 256, 128):
            rows = min(cand, _round_up(m, 8))
            if _tile_bytes(rows) <= budget:
                tm = rows
                break
    else:
        tm = min(_round_up(tm, 8), _round_up(m, 8))
    nt = pl.cdiv(m, tm)
    vmem_limit = int(min(max(2 * _tile_bytes(tm), 32 * 1024 * 1024),
                         int(0.75 * vmem_cap)))

    # ---- pass 1: conv matmul + channel statistics, y staged in bf16 ----
    y_staged, ch_sum, ch_ssq = pl.pallas_call(
        functools.partial(_conv_stats_kernel, m_valid=m, tm=tm),
        out_shape=(jax.ShapeDtypeStruct((m, coutp), jnp.bfloat16),
                   jax.ShapeDtypeStruct((1, coutp), jnp.float32),
                   jax.ShapeDtypeStruct((1, coutp), jnp.float32)),
        grid_spec=pltpu.PrefetchScalarGridSpec(
            num_scalar_prefetch=0,
            grid=(nt,),
            in_specs=[pl.BlockSpec((tm, k), lambda i: (i, 0)),        # A row tile
                      pl.BlockSpec((k, coutp), lambda i: (0, 0))],    # W (resident)
            out_specs=[pl.BlockSpec((tm, coutp), lambda i: (i, 0)),   # staged y
                       pl.BlockSpec((1, coutp), lambda i: (0, 0)),    # sum (resident)
                       pl.BlockSpec((1, coutp), lambda i: (0, 0))]),  # sumsq (resident)
        compiler_params=pltpu.CompilerParams(
            # The row-tile axis carries the stats accumulation -> must be "arbitrary".
            dimension_semantics=("arbitrary",),
            vmem_limit_bytes=vmem_limit),
    )(a, wmat)

    # ---- fold BN into per-channel (scale, shift) in plain JAX (negligible) ----
    inv_m = jnp.float32(1.0 / m)
    mean = ch_sum * inv_m
    # TODO(synk): E[y^2]-E[y]^2 can cancel for extreme |mean|/std ratios; a centered
    #             second stats pass would tighten it.  f32 accumulation suffices here.
    var = jnp.maximum(ch_ssq * inv_m - mean * mean, 0.0)
    g = jnp.pad(gamma.astype(jnp.float32).reshape(1, cout),
                ((0, 0), (0, coutp - cout)))
    b = jnp.pad(beta.astype(jnp.float32).reshape(1, cout),
                ((0, 0), (0, coutp - cout)))
    scale = g * lax.rsqrt(var + eps)
    shift = b - mean * scale

    # ---- pass 2: in-place BN scale/shift + LeakyReLU over the staged y ----
    normalized = pl.pallas_call(
        functools.partial(_bn_lrelu_kernel, slope=slope),
        out_shape=jax.ShapeDtypeStruct((m, coutp), jnp.bfloat16),
        grid_spec=pltpu.PrefetchScalarGridSpec(
            num_scalar_prefetch=0,
            grid=(nt,),
            in_specs=[pl.BlockSpec((tm, coutp), lambda i: (i, 0)),    # staged y
                      pl.BlockSpec((1, coutp), lambda i: (0, 0)),     # scale
                      pl.BlockSpec((1, coutp), lambda i: (0, 0))],    # shift
            out_specs=pl.BlockSpec((tm, coutp), lambda i: (i, 0))),
        input_output_aliases={0: 0},        # rewrite the staged y buffer in place
        compiler_params=pltpu.CompilerParams(
            dimension_semantics=("parallel",),   # embarrassingly parallel epilogue
            vmem_limit_bytes=vmem_limit),
    )(y_staged, scale, shift)

    # Slice off the Cout padding, [M, Cout] -> [N, Ho, Wo, Cout] -> NCHW, cast back.
    out = normalized[:, :cout].reshape(n, ho, wo, cout)
    return out.transpose(0, 3, 1, 2).astype(out_dtype)


# ------------------------------ demo --------------------------------------------


if __name__ == "__main__":
    def _reference(x, weight, gamma, beta, stride, padding):
        return _conv_bn_lrelu_xla(x, weight, gamma, beta, stride=stride,
                                  padding=padding, eps=1e-5, slope=0.2)

    key = jax.random.PRNGKey(0)
    k1, k2, k3, k4 = jax.random.split(key, 4)

    # Case 1: ConvBlock(4 -> 8, k=3, s=1, p=1) on x of shape [2, 4, 16, 16] (NCHW).
    x1 = jax.random.normal(k1, (2, 4, 16, 16), jnp.float32)
    w1 = jax.random.normal(k2, (8, 4, 3, 3), jnp.float32) * 0.1
    g1 = jnp.ones((8,), jnp.float32)     # BatchNorm2d default affine init
    b1 = jnp.zeros((8,), jnp.float32)
    o1 = conv_block_forward(x1, w1, g1, b1, stride=1, padding=1,
                            allow_xla_fallback=False)   # force the Pallas path
    o1 = jax.block_until_ready(o1)
    r1 = _reference(x1, w1, g1, b1, 1, 1)
    # bf16 MXU operands + bf16 staged y -> looser tolerance than pure f32.
    np.testing.assert_allclose(np.asarray(o1), np.asarray(r1), rtol=3e-2, atol=3e-2)
    assert o1.shape == (2, 8, 16, 16) and o1.dtype == x1.dtype

    # Case 2: non-divisible row count (2*17*17 = 578 rows) with affine BN params and a
    # small forced tile -> exercises the partial tail tile / in-kernel row masking.
    x2 = jax.random.normal(k3, (2, 3, 17, 17), jnp.float32)
    w2 = jax.random.normal(k4, (16, 3, 3, 3), jnp.float32) * 0.1
    g2 = jnp.linspace(0.5, 1.5, 16, dtype=jnp.float32)
    b2 = jnp.linspace(-0.2, 0.2, 16, dtype=jnp.float32)
    o2 = conv_block_forward(x2, w2, g2, b2, stride=1, padding=1, tm=256,
                            allow_xla_fallback=False)
    o2 = jax.block_until_ready(o2)
    r2 = _reference(x2, w2, g2, b2, 1, 1)
    np.testing.assert_allclose(np.asarray(o2), np.asarray(r2), rtol=3e-2, atol=3e-2)
    assert o2.shape == (2, 16, 17, 17)

    print("KERNEL_OK")
</pallas_src>

<mosaic_0001>
module attributes {stable_mosaic.version = 11 : i64} {
  func.func @_conv_stats_kernel(%arg0: i32, %arg1: memref<512x36xbf16, #tpu.memory_space<vmem>>, %arg2: memref<36x128xbf16, #tpu.memory_space<vmem>>, %arg3: memref<512x128xbf16, #tpu.memory_space<vmem>>, %arg4: memref<1x128xf32, #tpu.memory_space<vmem>>, %arg5: memref<1x128xf32, #tpu.memory_space<vmem>>) attributes {dimension_semantics = [#tpu.dimension_semantics<arbitrary>], iteration_bounds = array<i64: 1>, scalar_prefetch = 0 : i64, scratch_operands = 0 : i64, tpu.core_type = #tpu.core_type<tc>, window_params = [{transform_indices = @transform_0, window_bounds = array<i64: 512, 36>}, {pipeline_mode = #tpu.pipeline_mode<synchronous>, transform_indices = @transform_1, window_bounds = array<i64: 36, 128>}, {transform_indices = @transform_2, window_bounds = array<i64: 512, 128>}, {pipeline_mode = #tpu.pipeline_mode<synchronous>, transform_indices = @transform_3, window_bounds = array<i64: 1, 128>}, {pipeline_mode = #tpu.pipeline_mode<synchronous>, transform_indices = @transform_4, window_bounds = array<i64: 1, 128>}]} {
    %c0 = arith.constant 0 : index
    %c0_0 = arith.constant 0 : index
    %0 = vector.load %arg1[%c0, %c0_0] : memref<512x36xbf16, #tpu.memory_space<vmem>>, vector<512x36xbf16>
    %c0_1 = arith.constant 0 : index
    %c0_2 = arith.constant 0 : index
    %1 = vector.load %arg2[%c0_1, %c0_2] : memref<36x128xbf16, #tpu.memory_space<vmem>>, vector<36x128xbf16>
    %cst = arith.constant dense<0.000000e+00> : vector<512x128xf32>
    %2 = tpu.matmul %0, %1, %cst {dimension_numbers = #tpu.dot_dimension_numbers<[1], [0], [0], [1], [0, 0, 1, 1], [], []>} : vector<512x36xbf16>, vector<36x128xbf16>, vector<512x128xf32> -> vector<512x128xf32>
    %c0_i32 = arith.constant 0 : i32
    %3 = arith.cmpi eq, %arg0, %c0_i32 : i32
    %4 = arith.extui %3 : i1 to i32
    %c0_i32_3 = arith.constant 0 : i32
    %5 = arith.cmpi ne, %4, %c0_i32_3 : i32
    scf.if %5 {
      %cst_9 = arith.constant 0.000000e+00 : f32
      %14 = vector.broadcast %cst_9 : f32 to vector<1x128xf32>
      %c0_10 = arith.constant 0 : index
      %c0_11 = arith.constant 0 : index
      %15 = vector.load %arg4[%c0_10, %c0_11] : memref<1x128xf32, #tpu.memory_space<vmem>>, vector<1x128xf32>
      tpu.vector_store %arg4[%c0_10, %c0_11], %14 {strides = array<i32>} : memref<1x128xf32, #tpu.memory_space<vmem>>, vector<1x128xf32>,
      %cst_12 = arith.constant 0.000000e+00 : f32
      %16 = vector.broadcast %cst_12 : f32 to vector<1x128xf32>
      %c0_13 = arith.constant 0 : index
      %c0_14 = arith.constant 0 : index
      %17 = vector.load %arg5[%c0_13, %c0_14] : memref<1x128xf32, #tpu.memory_space<vmem>>, vector<1x128xf32>
      tpu.vector_store %arg5[%c0_13, %c0_14], %16 {strides = array<i32>} : memref<1x128xf32, #tpu.memory_space<vmem>>, vector<1x128xf32>,
    } else {
    }
    %c0_i32_4 = arith.constant 0 : i32
    %6 = arith.cmpi eq, %arg0, %c0_i32_4 : i32
    %true = arith.constant true
    %7 = arith.xori %6, %true : i1
    %8 = arith.extui %7 : i1 to i32
    %c0_i32_5 = arith.constant 0 : i32
    %9 = arith.cmpi ne, %8, %c0_i32_5 : i32
    scf.if %9 {
      %c0_9 = arith.constant 0 : index
      %c0_10 = arith.constant 0 : index
      %14 = vector.load %arg4[%c0_9, %c0_10] : memref<1x128xf32, #tpu.memory_space<vmem>>, vector<1x128xf32>
      %cst_11 = arith.constant dense<0.000000e+00> : vector<128xf32>
      %15 = vector.multi_reduction <add>, %2, %cst_11 [0] : vector<512x128xf32> to vector<128xf32>
      %16 = vector.shape_cast %15 : vector<128xf32> to vector<1x128xf32>
      %17 = arith.addf %14, %16 : vector<1x128xf32>
      %c0_12 = arith.constant 0 : index
      %c0_13 = arith.constant 0 : index
      %18 = vector.load %arg4[%c0_12, %c0_13] : memref<1x128xf32, #tpu.memory_space<vmem>>, vector<1x128xf32>
      tpu.vector_store %arg4[%c0_12, %c0_13], %17 {strides = array<i32>} : memref<1x128xf32, #tpu.memory_space<vmem>>, vector<1x128xf32>,
      %c0_14 = arith.constant 0 : index
      %c0_15 = arith.constant 0 : index
      %19 = vector.load %arg5[%c0_14, %c0_15] : memref<1x128xf32, #tpu.memory_space<vmem>>, vector<1x128xf32>
      %20 = arith.mulf %2, %2 : vector<512x128xf32>
      %cst_16 = arith.constant dense<0.000000e+00> : vector<128xf32>
      %21 = vector.multi_reduction <add>, %20, %cst_16 [0] : vector<512x128xf32> to vector<128xf32>
      %22 = vector.shape_cast %21 : vector<128xf32> to vector<1x128xf32>
      %23 = arith.addf %19, %22 : vector<1x128xf32>
      %c0_17 = arith.constant 0 : index
      %c0_18 = arith.constant 0 : index
      %24 = vector.load %arg5[%c0_17, %c0_18] : memref<1x128xf32, #tpu.memory_space<vmem>>, vector<1x128xf32>
      tpu.vector_store %arg5[%c0_17, %c0_18], %23 {strides = array<i32>} : memref<1x128xf32, #tpu.memory_space<vmem>>, vector<1x128xf32>,
    } else {
    }
    %10 = arith.extui %6 : i1 to i32
    %c0_i32_6 = arith.constant 0 : i32
    %11 = arith.cmpi ne, %10, %c0_i32_6 : i32
    scf.if %11 {
      %14 = tpu.iota {dimensions = array<i32: 0>} : vector<512x128xi32>
      %c512_i32 = arith.constant 512 : i32
      %15 = arith.muli %arg0, %c512_i32 : i32
      %16 = vector.broadcast %15 : i32 to vector<512x128xi32>
      %17 = arith.addi %14, %16 : vector<512x128xi32>
      %c512_i32_9 = arith.constant 512 : i32
      %18 = vector.broadcast %c512_i32_9 : i32 to vector<512x128xi32>
      %19 = arith.cmpi slt, %17, %18 : vector<512x128xi32>
      %cst_10 = arith.constant 0.000000e+00 : f32
      %20 = vector.broadcast %cst_10 : f32 to vector<512x128xf32>
      %21 = arith.select %19, %2, %20 : vector<512x128xi1>, vector<512x128xf32>
      %c0_11 = arith.constant 0 : index
      %c0_12 = arith.constant 0 : index
      %22 = vector.load %arg4[%c0_11, %c0_12] : memref<1x128xf32, #tpu.memory_space<vmem>>, vector<1x128xf32>
      %cst_13 = arith.constant dense<0.000000e+00> : vector<128xf32>
      %23 = vector.multi_reduction <add>, %21, %cst_13 [0] : vector<512x128xf32> to vector<128xf32>
      %24 = vector.shape_cast %23 : vector<128xf32> to vector<1x128xf32>
      %25 = arith.addf %22, %24 : vector<1x128xf32>
      %c0_14 = arith.constant 0 : index
      %c0_15 = arith.constant 0 : index
      %26 = vector.load %arg4[%c0_14, %c0_15] : memref<1x128xf32, #tpu.memory_space<vmem>>, vector<1x128xf32>
      tpu.vector_store %arg4[%c0_14, %c0_15], %25 {strides = array<i32>} : memref<1x128xf32, #tpu.memory_space<vmem>>, vector<1x128xf32>,
      %c0_16 = arith.constant 0 : index
      %c0_17 = arith.constant 0 : index
      %27 = vector.load %arg5[%c0_16, %c0_17] : memref<1x128xf32, #tpu.memory_space<vmem>>, vector<1x128xf32>
      %28 = arith.mulf %21, %21 : vector<512x128xf32>
      %cst_18 = arith.constant dense<0.000000e+00> : vector<128xf32>
      %29 = vector.multi_reduction <add>, %28, %cst_18 [0] : vector<512x128xf32> to vector<128xf32>
      %30 = vector.shape_cast %29 : vector<128xf32> to vector<1x128xf32>
      %31 = arith.addf %27, %30 : vector<1x128xf32>
      %c0_19 = arith.constant 0 : index
      %c0_20 = arith.constant 0 : index
      %32 = vector.load %arg5[%c0_19, %c0_20] : memref<1x128xf32, #tpu.memory_space<vmem>>, vector<1x128xf32>
      tpu.vector_store %arg5[%c0_19, %c0_20], %31 {strides = array<i32>} : memref<1x128xf32, #tpu.memory_space<vmem>>, vector<1x128xf32>,
    } else {
    }
    %12 = arith.truncf %2 : vector<512x128xf32> to vector<512x128xbf16>
    %c0_7 = arith.constant 0 : index
    %c0_8 = arith.constant 0 : index
    %13 = vector.load %arg3[%c0_7, %c0_8] : memref<512x128xbf16, #tpu.memory_space<vmem>>, vector<512x128xbf16>
    tpu.vector_store %arg3[%c0_7, %c0_8], %12 {strides = array<i32>} : memref<512x128xbf16, #tpu.memory_space<vmem>>, vector<512x128xbf16>,
    return
  }
  func.func @transform_0(%arg0: i32) -> (i32, i32) {
    %c0_i32 = arith.constant 0 : i32
    %c0_i32_0 = arith.constant 0 : i32
    return %arg0, %c0_i32 : i32, i32
  }
  func.func @transform_1(%arg0: i32) -> (i32, i32) {
    %c0_i32 = arith.constant 0 : i32
    %c0_i32_0 = arith.constant 0 : i32
    %c0_i32_1 = arith.constant 0 : i32
    return %c0_i32, %c0_i32_0 : i32, i32
  }
  func.func @transform_2(%arg0: i32) -> (i32, i32) {
    %c0_i32 = arith.constant 0 : i32
    %c0_i32_0 = arith.constant 0 : i32
    return %arg0, %c0_i32 : i32, i32
  }
  func.func @transform_3(%arg0: i32) -> (i32, i32) {
    %c0_i32 = arith.constant 0 : i32
    %c0_i32_0 = arith.constant 0 : i32
    %c0_i32_1 = arith.constant 0 : i32
    return %c0_i32, %c0_i32_0 : i32, i32
  }
  func.func @transform_4(%arg0: i32) -> (i32, i32) {
    %c0_i32 = arith.constant 0 : i32
    %c0_i32_0 = arith.constant 0 : i32
    %c0_i32_1 = arith.constant 0 : i32
    return %c0_i32, %c0_i32_0 : i32, i32
  }
}

</mosaic_0001>

<bundles_post_ra>
// kernel: tpu_custom_call.1
= control target key start
LH: loop header
LB: loop body
LE: loop exit
PB: predicated region body
PF: predicated region fallthrough
CT: control target
= control target key end

     0   :  { %10 = vsyncpa [#allocation3], 0  ;;  %vm261_vm0 = vcmask 293888   ;;  %vm358_vm1 = vcmask 1041408   ;;  %s2716_s0 = inlined_call_operand.vmem [shape: bf16[512,36], index: 0, kind: input, shape index: {}]   ;;  %s2717_s1 = inlined_call_operand.vmem [shape: bf16[36,128], index: 1, kind: input, shape index: {}]   ;;  %s2718_s2 = inlined_call_operand.hbm [shape: bf16[512,128], index: 2, kind: output, shape index: {0}]   ;;  %s2719_s3 = inlined_call_operand.hbm [shape: f32[1,128], index: 3, kind: output, shape index: {1}]   ;;  %s2720_s4 = inlined_call_operand.hbm [shape: f32[1,128], index: 4, kind: output, shape index: {2}]  }
   0x1   :  { %v2207_v0 = vld [vmem:[%s2717_s1] sm:$0xff]   ;;  %v2208_v1 = vld [vmem:[%s2717_s1 + $0x8] sm:$0xff]   ;;  %v2209_v2 = vld [vmem:[%s2717_s1 + $0x10] ss:$0 sps:$4 sm:$0x33]  }
   0x2   :  { %2123 = vmatprep.subr.bf16.mxu0 %v2207_v0  ;;  %v2210_v3 = vld [vmem:[%s2716_s0] sm:$0xff]   ;;  %2193 = vmatprep.subr.bf16.mxu1 %v2207_v0  ;;  %v360_v4 = vsel %vm358_vm1, %v2209_v2, 0  ;;  %v2211_v5 = vld [vmem:[%s2716_s0 + $0x8] sm:$0xff]   ;;  %v2212_v6 = vld [vmem:[%s2716_s0 + $0x10] sm:$0xff]  }
   0x3   :  { %2124 = vmatpush3.bf16.msra.mxu0 %v2207_v0  ;;  %2196 = vmatpush3.bf16.msra.mxu1 %v2207_v0  ;;  %v2213_v7 = vld [vmem:[%s2716_s0 + $0x18] sm:$0xff]   ;;  %v2214_v8 = vld [vmem:[%s2716_s0 + $0x20] sm:$0xff]   ;;  %v2227_v10 = vld [vmem:[%s2716_s0 + $0x88] sm:$0xff]  }
   0x4   :  { %2125 = vmatprep.subr.bf16.mxu0 %v2208_v1  ;;  %2129 = vmatprep.mubr.msk.bf16.mxu0 %vm261_vm0, %v2210_v3  ;;  %v2226_v9 = vld [vmem:[%s2716_s0 + $0x80] sm:$0xff]   ;;  %v2228_v11 = vld [vmem:[%s2716_s0 + $0x90] sm:$0xff]   ;;  %v2215_v12 = vld [vmem:[%s2716_s0 + $0x28] sm:$0xff]  }
   0x5   :  { %2194 = vmatprep.subr.bf16.mxu1 %v2208_v1  ;;  %2161 = vmatprep.mubr.msk.bf16.mxu1 %vm261_vm0, %v2226_v9  ;;  %v2216_v13 = vld [vmem:[%s2716_s0 + $0x30] sm:$0xff]   ;;  %v2229_v14 = vld [vmem:[%s2716_s0 + $0x98] sm:$0xff]   ;;  %v2230_v15 = vld [vmem:[%s2716_s0 + $0xa0] sm:$0xff]  }
   0x6   :  { %v2217_v16 = vld [vmem:[%s2716_s0 + $0x38] sm:$0xff]   ;;  %v2231_v17 = vld [vmem:[%s2716_s0 + $0xa8] sm:$0xff]  }
   0x7   :  { %2126 = vmatpush3.bf16.msra.mxu0 %v2208_v1  ;;  %2197 = vmatpush3.bf16.msra.mxu1 %v2208_v1 }
   0x8   :  { %2199 = vmatprep.subr.msk.bf16.mxu0 %vm358_vm1, %v2209_v2  ;;  %2200 = vmatprep.subr.msk.bf16.mxu1 %vm358_vm1, %v2209_v2 }
   0xb   :  { %2128 = vmatpush3.bf16.msra.mxu0 %v360_v4  ;;  %2198 = vmatpush3.bf16.msra.mxu1 %v360_v4 }
   0xe   :  { %2130 = vmatmul.mubr.msk.bf16.vlgmr.msra.gmra.mrb[0].mxu0 %vm261_vm0, %v2211_v5  ;;  %2162 = vmatmul.mubr.msk.bf16.vlgmr.msra.gmra.mrb[0].mxu1 %vm261_vm0, %v2227_v10 }
   0xf   :  { %2133 = vmatprep.mubr.msk.bf16.mxu0 %vm261_vm0, %v2212_v6  ;;  %2165 = vmatprep.mubr.msk.bf16.mxu1 %vm261_vm0, %v2228_v11 }
  0x16   :  { %2134 = vmatmul.mubr.msk.bf16.gmra.mrb[4].mxu0 %vm261_vm0, %v2213_v7  ;;  %2166 = vmatmul.mubr.msk.bf16.gmra.mrb[4].mxu1 %vm261_vm0, %v2229_v14 }
  0x17   :  { %2137 = vmatprep.mubr.msk.bf16.mxu0 %vm261_vm0, %v2214_v8  ;;  %2169 = vmatprep.mubr.msk.bf16.mxu1 %vm261_vm0, %v2230_v15 }
  0x1e   :  { %2138 = vmatmul.mubr.msk.bf16.gmra.mrb[8].mxu0 %vm261_vm0, %v2215_v12 }
  0x1f   :  { %2141 = vmatprep.mubr.msk.bf16.mxu0 %vm261_vm0, %v2216_v13 }
  0x20   :  { %11 = vsyncpa [#allocation5], 0  ;;  %v2218_v18 = vld [vmem:[%s2716_s0 + $0x40] sm:$0xff]   ;;  %v2232_v19 = vld [vmem:[%s2716_s0 + $0xb0] sm:$0xff]   ;;  %2170 = vmatmul.mubr.msk.bf16.gmra.mrb[8].mxu1 %vm261_vm0, %v2231_v17  ;;  %v2312_v48 = vmov 0.0  }
  0x21   :  { %2173 = vmatprep.mubr.msk.bf16.mxu1 %vm261_vm0, %v2232_v19  ;;  %v2219_v20 = vld [vmem:[%s2716_s0 + $0x48] sm:$0xff]   ;;  %v2233_v21 = vld [vmem:[%s2716_s0 + $0xb8] sm:$0xff]   ;;  %v2220_v22 = vld [vmem:[%s2716_s0 + $0x50] sm:$0xff]   ;;  %655 = vst [vmem:[#allocation4] sm:$0x1] %v2312_v48 }
  0x22   :  { %v2234_v23 = vld [vmem:[%s2716_s0 + $0xc0] sm:$0xff]   ;;  %v2221_v24 = vld [vmem:[%s2716_s0 + $0x58] sm:$0xff]   ;;  %v2235_v25 = vld [vmem:[%s2716_s0 + $0xc8] sm:$0xff]   ;;  %656 = vst [vmem:[#allocation6] sm:$0x1] %v2312_v48 }
  0x23   :  { %v2222_v26 = vld [vmem:[%s2716_s0 + $0x60] sm:$0xff]   ;;  %v2236_v27 = vld [vmem:[%s2716_s0 + $0xd0] sm:$0xff]   ;;  %v2223_v28 = vld [vmem:[%s2716_s0 + $0x68] sm:$0xff]  }
  0x24   :  { %v2237_v29 = vld [vmem:[%s2716_s0 + $0xd8] sm:$0xff]   ;;  %v2224_v30 = vld [vmem:[%s2716_s0 + $0x70] sm:$0xff]   ;;  %v2238_v31 = vld [vmem:[%s2716_s0 + $0xe0] sm:$0xff]  }
  0x25   :  { %v2225_v32 = vld [vmem:[%s2716_s0 + $0x78] sm:$0xff]   ;;  %v2239_v33 = vld [vmem:[%s2716_s0 + $0xe8] sm:$0xff]   ;;  %v2240_v34 = vld [vmem:[%s2716_s0 + $0xf0] sm:$0xff]  }
  0x26   :  { %2142 = vmatmul.mubr.msk.bf16.gmra.mrb[12].mxu0 %vm261_vm0, %v2217_v16  ;;  %v2241_v35 = vld [vmem:[%s2716_s0 + $0xf8] sm:$0xff]   ;;  %s2313_s0 = smov [#allocation2]  }
  0x27   :  { %2145 = vmatprep.mubr.msk.bf16.mxu0 %vm261_vm0, %v2218_v18  ;;  %s1664_s30 = sshll.u32 %s2313_s0, 4  ;;  %s1665_s30 = int_to_ptr.vmem [resolvable:$true] %s1664_s30 }
  0x28   :  { %2174 = vmatmul.mubr.msk.bf16.gmra.mrb[12].mxu1 %vm261_vm0, %v2233_v21  ;;  %s2242_s5 = scalar_lea.vmem %s1665_s30, 4096  ;;  %p2247_p1 = scmp.lt.s32.totalorder %s1665_s30, %s1665_s30 }
  0x29   :  { %2177 = vmatprep.mubr.msk.bf16.mxu1 %vm261_vm0, %v2234_v23  ;;  %p2243_p0 = scmp.ne.s32.totalorder %s1665_s30, %s2242_s5  ;;  %p2248_p2 = scmp.lt.s32.totalorder %s2242_s5, %s2242_s5 }
  0x2b   :  { %p2249_p3 = por %p2248_p2, %p2247_p1 }
  0x2d   :  { %p2250_p4 = pnand %p2249_p3, %p2243_p0 }
  0x2e   :  { %2146 = vmatmul.mubr.msk.bf16.gmra.mrb[16].mxu0 %vm261_vm0, %v2219_v20 }
  0x2f   :  { %2149 = vmatprep.mubr.msk.bf16.mxu0 %vm261_vm0, %v2220_v22 }
  0x30   :  { %2178 = vmatmul.mubr.msk.bf16.gmra.mrb[16].mxu1 %vm261_vm0, %v2235_v25 }
  0x31   :  { %2181 = vmatprep.mubr.msk.bf16.mxu1 %vm261_vm0, %v2236_v27 }
  0x36   :  { %2150 = vmatmul.mubr.msk.bf16.gmra.mrb[20].mxu0 %vm261_vm0, %v2221_v24 }
  0x37   :  { %2153 = vmatprep.mubr.msk.bf16.mxu0 %vm261_vm0, %v2222_v26 }
  0x38   :  { %2182 = vmatmul.mubr.msk.bf16.gmra.mrb[20].mxu1 %vm261_vm0, %v2237_v29 }
  0x39   :  { %2185 = vmatprep.mubr.msk.bf16.mxu1 %vm261_vm0, %v2238_v31 }
  0x3e   :  { %2154 = vmatmul.mubr.msk.bf16.gmra.mrb[24].mxu0 %vm261_vm0, %v2223_v28 }
  0x3f   :  { %2157 = vmatprep.mubr.msk.bf16.mxu0 %vm261_vm0, %v2224_v30 }
  0x40   :  { %2186 = vmatmul.mubr.msk.bf16.gmra.mrb[24].mxu1 %vm261_vm0, %v2239_v33 }
  0x41   :  { %2189 = vmatprep.mubr.msk.bf16.mxu1 %vm261_vm0, %v2240_v34 }
  0x46   :  { %2158 = vmatmul.mubr.msk.bf16.gmra.mrb[28].mxu0 %vm261_vm0, %v2225_v32 }
  0x48   :  { %2190 = vmatmul.mubr.msk.bf16.gmra.mrb[28].mxu1 %vm261_vm0, %v2241_v35 }
  0xe1   :  { %v2131_v36 = vpop.f32.mrb[0].mxu0  ;;  %v2480_v53 = vpop.f32.mrb[0].mxu1 }
  0xe2   :  { %v396_v37 = vpop.f32.mrb[1].mxu0  ;;  %v1206_v45 = vmul.f32 %v2131_v36, %v2131_v36  ;;  %v2482_v55 = vpop.f32.mrb[1].mxu1 }
  0xe3   :  { %v2132_v38 = vpop.f32.mrb[2].mxu0  ;;  %v1204_v41 = vmul.f32 %v396_v37, %v396_v37  ;;  %v2484_v60 = vpop.f32.mrb[2].mxu1 }
  0xe4   :  { %v1905_v39 = vpack.c.bf16 %v2132_v38, %v2131_v36  ;;  %v399_v40 = vpop.f32.mrb[3].mxu0  ;;  %v1207_v49 = vmul.f32 %v2132_v38, %v2132_v38  ;;  %v1985_v63 = vpack.c.bf16 %v2484_v60, %v2480_v53  ;;  %v2488_v0 = vpop.f32.mrb[3].mxu1 }
  0xe5   :  { %v1132_v42 = vadd.f32 %v399_v40, %v396_v37  ;;  %v1205_v43 = vmul.f32 %v399_v40, %v399_v40  ;;  %v1900_v44 = vpack.c.bf16 %v399_v40, %v396_v37  ;;  %v1980_v5 = vpack.c.bf16 %v2488_v0, %v2482_v55 }
  0xe6   :  { %2057 = vst [vmem:[#allocation2 + $0x8] sm:$0xff] %v1905_v39   ;;  %2073 = vst [vmem:[#allocation2 + $0x88] sm:$0xff] %v1985_v63  }
  0xe7   :  { %v1133_v46 = vadd.f32 %v2131_v36, %v1132_v42  ;;  %v1268_v47 = vadd.f32 %v1205_v43, %v1204_v41  ;;  %1901 = vst [vmem:[#allocation2] sm:$0xff] %v1900_v44   ;;  %2072 = vst [vmem:[#allocation2 + $0x80] sm:$0xff] %v1980_v5  }
  0xe9   :  { %v1269_v50 = vadd.f32 %v1268_v47, %v1206_v45  ;;  %v2135_v51 = vpop.f32.mrb[4].mxu0  ;;  %v1134_v52 = vadd.f32 %v2132_v38, %v1133_v46  ;;  %v2492_v13 = vpop.f32.mrb[4].mxu1 }
  0xea   :  { %v412_v54 = vpop.f32.mrb[5].mxu0  ;;  %v1210_v6 = vmul.f32 %v2135_v51, %v2135_v51  ;;  %v2494_v15 = vpop.f32.mrb[5].mxu1 }
  0xeb   :  { %v1135_v56 = vadd.f32 %v1134_v52, %v412_v54  ;;  %v1208_v57 = vmul.f32 %v412_v54, %v412_v54  ;;  %v1270_v58 = vadd.f32 %v1269_v50, %v1207_v49  ;;  %v2136_v59 = vpop.f32.mrb[6].mxu0  ;;  %v2496_v20 = vpop.f32.mrb[6].mxu1 }
  0xec   :  { %v1915_v61 = vpack.c.bf16 %v2136_v59, %v2135_v51  ;;  %v415_v62 = vpop.f32.mrb[7].mxu0  ;;  %v1211_v9 = vmul.f32 %v2136_v59, %v2136_v59  ;;  %v1995_v23 = vpack.c.bf16 %v2496_v20, %v2492_v13  ;;  %v2500_v24 = vpop.f32.mrb[7].mxu1 }
  0xed   :  { %v1271_v1 = vadd.f32 %v1270_v58, %v1208_v57  ;;  %v1136_v2 = vadd.f32 %v1135_v56, %v415_v62  ;;  %v1209_v3 = vmul.f32 %v415_v62, %v415_v62  ;;  %v1910_v4 = vpack.c.bf16 %v415_v62, %v412_v54 }
  0xee   :  { %2059 = vst [vmem:[#allocation2 + $0x18] sm:$0xff] %v1915_v61   ;;  %2075 = vst [vmem:[#allocation2 + $0x98] sm:$0xff] %v1995_v23   ;;  %v1990_v29 = vpack.c.bf16 %v2500_v24, %v2494_v15 }
  0xef   :  { %v1137_v7 = vadd.f32 %v2135_v51, %v1136_v2  ;;  %v1272_v8 = vadd.f32 %v1271_v1, %v1209_v3  ;;  %2058 = vst [vmem:[#allocation2 + $0x10] sm:$0xff] %v1910_v4  }
  0xf0   :  { %2074 = vst [vmem:[#allocation2 + $0x90] sm:$0xff] %v1990_v29  }
  0xf1   :  { %v1273_v10 = vadd.f32 %v1272_v8, %v1210_v6  ;;  %v2139_v11 = vpop.f32.mrb[8].mxu0  ;;  %v1138_v12 = vadd.f32 %v2136_v59, %v1137_v7 }
  0xf2   :  { %v428_v14 = vpop.f32.mrb[9].mxu0  ;;  %v1214_v30 = vmul.f32 %v2139_v11, %v2139_v11 }
  0xf3   :  { %v1139_v16 = vadd.f32 %v1138_v12, %v428_v14  ;;  %v1212_v17 = vmul.f32 %v428_v14, %v428_v14  ;;  %v1274_v18 = vadd.f32 %v1273_v10, %v1211_v9  ;;  %v2140_v19 = vpop.f32.mrb[10].mxu0  ;;  %v2504_v37 = vpop.f32.mrb[8].mxu1 }
  0xf4   :  { %v1925_v21 = vpack.c.bf16 %v2140_v19, %v2139_v11  ;;  %v431_v22 = vpop.f32.mrb[11].mxu0  ;;  %v1215_v33 = vmul.f32 %v2140_v19, %v2140_v19  ;;  %v2506_v39 = vpop.f32.mrb[9].mxu1 }
  0xf5   :  { %v1275_v25 = vadd.f32 %v1274_v18, %v1212_v17  ;;  %v1140_v26 = vadd.f32 %v1139_v16, %v431_v22  ;;  %v1213_v27 = vmul.f32 %v431_v22, %v431_v22  ;;  %v1920_v28 = vpack.c.bf16 %v431_v22, %v428_v14  ;;  %v2508_v44 = vpop.f32.mrb[10].mxu1 }
  0xf6   :  { %2061 = vst [vmem:[#allocation2 + $0x28] sm:$0xff] %v1925_v21   ;;  %v2005_v47 = vpack.c.bf16 %v2508_v44, %v2504_v37  ;;  %v2512_v48 = vpop.f32.mrb[11].mxu1 }
  0xf7   :  { %v1141_v31 = vadd.f32 %v2139_v11, %v1140_v26  ;;  %v1276_v32 = vadd.f32 %v1275_v25, %v1213_v27  ;;  %2060 = vst [vmem:[#allocation2 + $0x20] sm:$0xff] %v1920_v28   ;;  %v2000_v54 = vpack.c.bf16 %v2512_v48, %v2506_v39 }
  0xf8   :  { %2077 = vst [vmem:[#allocation2 + $0xa8] sm:$0xff] %v2005_v47  }
  0xf9   :  { %v1277_v34 = vadd.f32 %v1276_v32, %v1214_v30  ;;  %v2143_v35 = vpop.f32.mrb[12].mxu0  ;;  %v1142_v36 = vadd.f32 %v2140_v19, %v1141_v31  ;;  %2076 = vst [vmem:[#allocation2 + $0xa0] sm:$0xff] %v2000_v54  }
  0xfa   :  { %v444_v38 = vpop.f32.mrb[13].mxu0  ;;  %v1218_v56 = vmul.f32 %v2143_v35, %v2143_v35 }
  0xfb   :  { %v1143_v40 = vadd.f32 %v1142_v36, %v444_v38  ;;  %v1216_v41 = vmul.f32 %v444_v38, %v444_v38  ;;  %v1278_v42 = vadd.f32 %v1277_v34, %v1215_v33  ;;  %v2144_v43 = vpop.f32.mrb[14].mxu0  ;;  %v2516_v1 = vpop.f32.mrb[12].mxu1 }
  0xfc   :  { %v1935_v45 = vpack.c.bf16 %v2144_v43, %v2143_v35  ;;  %v447_v46 = vpop.f32.mrb[15].mxu0  ;;  %v1219_v59 = vmul.f32 %v2144_v43, %v2144_v43  ;;  %v2518_v3 = vpop.f32.mrb[13].mxu1 }
  0xfd   :  { %v1279_v49 = vadd.f32 %v1278_v42, %v1216_v41  ;;  %v1144_v50 = vadd.f32 %v1143_v40, %v447_v46  ;;  %v1217_v51 = vmul.f32 %v447_v46, %v447_v46  ;;  %v1930_v52 = vpack.c.bf16 %v447_v46, %v444_v38  ;;  %v2520_v8 = vpop.f32.mrb[14].mxu1 }
  0xfe   :  { %2063 = vst [vmem:[#allocation2 + $0x38] sm:$0xff] %v1935_v45   ;;  %v2015_v11 = vpack.c.bf16 %v2520_v8, %v2516_v1  ;;  %v2524_v12 = vpop.f32.mrb[15].mxu1 }
  0xff   :  { %v1145_v57 = vadd.f32 %v2143_v35, %v1144_v50  ;;  %v1280_v58 = vadd.f32 %v1279_v49, %v1217_v51  ;;  %2062 = vst [vmem:[#allocation2 + $0x30] sm:$0xff] %v1930_v52   ;;  %v2010_v19 = vpack.c.bf16 %v2524_v12, %v2518_v3 }
 0x100   :  { %2079 = vst [vmem:[#allocation2 + $0xb8] sm:$0xff] %v2015_v11  }
 0x101   :  { %v1281_v61 = vadd.f32 %v1280_v58, %v1218_v56  ;;  %v2147_v62 = vpop.f32.mrb[16].mxu0  ;;  %v1146_v63 = vadd.f32 %v2144_v43, %v1145_v57  ;;  %2078 = vst [vmem:[#allocation2 + $0xb0] sm:$0xff] %v2010_v19  }
 0x102   :  { %v460_v2 = vpop.f32.mrb[17].mxu0  ;;  %v1222_v21 = vmul.f32 %v2147_v62, %v2147_v62 }
 0x103   :  { %v1147_v4 = vadd.f32 %v1146_v63, %v460_v2  ;;  %v1220_v5 = vmul.f32 %v460_v2, %v460_v2  ;;  %v1282_v6 = vadd.f32 %v1281_v61, %v1219_v59  ;;  %v2148_v7 = vpop.f32.mrb[18].mxu0  ;;  %v2528_v29 = vpop.f32.mrb[16].mxu1 }
 0x104   :  { %v1945_v9 = vpack.c.bf16 %v2148_v7, %v2147_v62  ;;  %v463_v10 = vpop.f32.mrb[19].mxu0  ;;  %v1223_v25 = vmul.f32 %v2148_v7, %v2148_v7  ;;  %v2530_v31 = vpop.f32.mrb[17].mxu1 }
 0x105   :  { %v1283_v14 = vadd.f32 %v1282_v6, %v1220_v5  ;;  %v1148_v16 = vadd.f32 %v1147_v4, %v463_v10  ;;  %v1221_v17 = vmul.f32 %v463_v10, %v463_v10  ;;  %v1940_v18 = vpack.c.bf16 %v463_v10, %v460_v2  ;;  %v2532_v36 = vpop.f32.mrb[18].mxu1 }
 0x106   :  { %2065 = vst [vmem:[#allocation2 + $0x48] sm:$0xff] %v1945_v9   ;;  %v2025_v41 = vpack.c.bf16 %v2532_v36, %v2528_v29  ;;  %v2536_v42 = vpop.f32.mrb[19].mxu1 }
 0x107   :  { %v1149_v22 = vadd.f32 %v2147_v62, %v1148_v16  ;;  %v1284_v23 = vadd.f32 %v1283_v14, %v1221_v17  ;;  %2064 = vst [vmem:[#allocation2 + $0x40] sm:$0xff] %v1940_v18   ;;  %v2020_v49 = vpack.c.bf16 %v2536_v42, %v2530_v31 }
 0x108   :  { %2081 = vst [vmem:[#allocation2 + $0xc8] sm:$0xff] %v2025_v41  }
 0x109   :  { %v1285_v26 = vadd.f32 %v1284_v23, %v1222_v21  ;;  %v2151_v27 = vpop.f32.mrb[20].mxu0  ;;  %v1150_v28 = vadd.f32 %v2148_v7, %v1149_v22  ;;  %2080 = vst [vmem:[#allocation2 + $0xc0] sm:$0xff] %v2020_v49  }
 0x10a   :  { %v476_v30 = vpop.f32.mrb[21].mxu0  ;;  %v1226_v50 = vmul.f32 %v2151_v27, %v2151_v27 }
 0x10b   :  { %v1151_v32 = vadd.f32 %v1150_v28, %v476_v30  ;;  %v1224_v33 = vmul.f32 %v476_v30, %v476_v30  ;;  %v1286_v34 = vadd.f32 %v1285_v26, %v1223_v25  ;;  %v2152_v35 = vpop.f32.mrb[22].mxu0  ;;  %v2540_v59 = vpop.f32.mrb[20].mxu1 }
 0x10c   :  { %v1955_v38 = vpack.c.bf16 %v2152_v35, %v2151_v27  ;;  %v479_v40 = vpop.f32.mrb[23].mxu0  ;;  %v1227_v54 = vmul.f32 %v2152_v35, %v2152_v35  ;;  %v2542_v62 = vpop.f32.mrb[21].mxu1 }
 0x10d   :  { %v1287_v43 = vadd.f32 %v1286_v34, %v1224_v33  ;;  %v1152_v45 = vadd.f32 %v1151_v32, %v479_v40  ;;  %v1225_v46 = vmul.f32 %v479_v40, %v479_v40  ;;  %v1950_v47 = vpack.c.bf16 %v479_v40, %v476_v30  ;;  %v2544_v6 = vpop.f32.mrb[22].mxu1 }
 0x10e   :  { %2067 = vst [vmem:[#allocation2 + $0x58] sm:$0xff] %v1955_v38   ;;  %v2035_v10 = vpack.c.bf16 %v2544_v6, %v2540_v59  ;;  %v2548_v11 = vpop.f32.mrb[23].mxu1 }
 0x10f   :  { %v1153_v51 = vadd.f32 %v2151_v27, %v1152_v45  ;;  %v1288_v52 = vadd.f32 %v1287_v43, %v1225_v46  ;;  %2066 = vst [vmem:[#allocation2 + $0x50] sm:$0xff] %v1950_v47   ;;  %v2030_v19 = vpack.c.bf16 %v2548_v11, %v2542_v62 }
 0x110   :  { %2083 = vst [vmem:[#allocation2 + $0xd8] sm:$0xff] %v2035_v10  }
 0x111   :  { %v1289_v56 = vadd.f32 %v1288_v52, %v1226_v50  ;;  %v2155_v57 = vpop.f32.mrb[24].mxu0  ;;  %v1154_v58 = vadd.f32 %v2152_v35, %v1153_v51  ;;  %2082 = vst [vmem:[#allocation2 + $0xd0] sm:$0xff] %v2030_v19  }
 0x112   :  { %v492_v61 = vpop.f32.mrb[25].mxu0  ;;  %v1230_v21 = vmul.f32 %v2155_v57, %v2155_v57 }
 0x113   :  { %v1155_v63 = vadd.f32 %v1154_v58, %v492_v61  ;;  %v1228_v2 = vmul.f32 %v492_v61, %v492_v61  ;;  %v1290_v4 = vadd.f32 %v1289_v56, %v1227_v54  ;;  %v2156_v5 = vpop.f32.mrb[26].mxu0  ;;  %v2552_v30 = vpop.f32.mrb[24].mxu1 }
 0x114   :  { %v1965_v7 = vpack.c.bf16 %v2156_v5, %v2155_v57  ;;  %v495_v9 = vpop.f32.mrb[27].mxu0  ;;  %v1231_v25 = vmul.f32 %v2156_v5, %v2156_v5  ;;  %v2554_v33 = vpop.f32.mrb[25].mxu1 }
 0x115   :  { %v1291_v14 = vadd.f32 %v1290_v4, %v1228_v2  ;;  %v1156_v16 = vadd.f32 %v1155_v63, %v495_v9  ;;  %v1229_v17 = vmul.f32 %v495_v9, %v495_v9  ;;  %v1960_v18 = vpack.c.bf16 %v495_v9, %v492_v61  ;;  %v2556_v41 = vpop.f32.mrb[26].mxu1 }
 0x116   :  { %2069 = vst [vmem:[#allocation2 + $0x68] sm:$0xff] %v1965_v7   ;;  %v2045_v46 = vpack.c.bf16 %v2556_v41, %v2552_v30  ;;  %v2560_v47 = vpop.f32.mrb[27].mxu1  ;;  %v1236_v4 = vmul.f32 %v2482_v55, %v2482_v55 }
 0x117   :  { %v1157_v22 = vadd.f32 %v2155_v57, %v1156_v16  ;;  %v1292_v23 = vadd.f32 %v1291_v14, %v1229_v17  ;;  %2068 = vst [vmem:[#allocation2 + $0x60] sm:$0xff] %v1960_v18   ;;  %v2040_v54 = vpack.c.bf16 %v2560_v47, %v2554_v33 }
 0x118   :  { %2085 = vst [vmem:[#allocation2 + $0xe8] sm:$0xff] %v2045_v46  }
 0x119   :  { %v1293_v26 = vadd.f32 %v1292_v23, %v1230_v21  ;;  %v2159_v27 = vpop.f32.mrb[28].mxu0  ;;  %v1158_v28 = vadd.f32 %v2156_v5, %v1157_v22  ;;  %2084 = vst [vmem:[#allocation2 + $0xe0] sm:$0xff] %v2040_v54   ;;  %v1237_v21 = vmul.f32 %v2488_v0, %v2488_v0 }
 0x11a   :  { %v508_v32 = vpop.f32.mrb[29].mxu0  ;;  %v1234_v56 = vmul.f32 %v2159_v27, %v2159_v27 }
 0x11b   :  { %v1159_v34 = vadd.f32 %v1158_v28, %v508_v32  ;;  %v1232_v35 = vmul.f32 %v508_v32, %v508_v32  ;;  %v1294_v38 = vadd.f32 %v1293_v26, %v1231_v25  ;;  %v2160_v40 = vpop.f32.mrb[30].mxu0  ;;  %v2566_v5 = vpop.f32.mrb[28].mxu1 }
 0x11c   :  { %v1975_v43 = vpack.c.bf16 %v2160_v40, %v2159_v27  ;;  %v511_v45 = vpop.f32.mrb[31].mxu0  ;;  %v1235_v61 = vmul.f32 %v2160_v40, %v2160_v40  ;;  %v2568_v7 = vpop.f32.mrb[29].mxu1 }
 0x11d   :  { %v1295_v49 = vadd.f32 %v1294_v38, %v1232_v35  ;;  %v1160_v50 = vadd.f32 %v1159_v34, %v511_v45  ;;  %v1233_v51 = vmul.f32 %v511_v45, %v511_v45  ;;  %v1970_v52 = vpack.c.bf16 %v511_v45, %v508_v32  ;;  %v2571_v14 = vpop.f32.mrb[30].mxu1 }
 0x11e   :  { %2071 = vst [vmem:[#allocation2 + $0x78] sm:$0xff] %v1975_v43   ;;  %v2055_v16 = vpack.c.bf16 %v2571_v14, %v2566_v5  ;;  %v2575_v17 = vpop.f32.mrb[31].mxu1 }
 0x11f   :  { %v1161_v57 = vadd.f32 %v2159_v27, %v1160_v50  ;;  %v1296_v58 = vadd.f32 %v1295_v49, %v1233_v51  ;;  %2070 = vst [vmem:[#allocation2 + $0x70] sm:$0xff] %v1970_v52   ;;  %v2050_v22 = vpack.c.bf16 %v2575_v17, %v2568_v7 }
 0x120   :  { %2087 = vst [vmem:[#allocation2 + $0xf8] sm:$0xff] %v2055_v16  }
 0x121   :  { %v1297_v63 = vadd.f32 %v1296_v58, %v1234_v56  ;;  %v1162_v2 = vadd.f32 %v2160_v40, %v1161_v57  ;;  %2086 = vst [vmem:[#allocation2 + $0xf0] sm:$0xff] %v2050_v22  }
 0x123   :  { %v1163_v9 = vadd.f32 %v1162_v2, %v2482_v55  ;;  %v1298_v10 = vadd.f32 %v1297_v63, %v1235_v61  ;;  %v1238_v55 = vmul.f32 %v2480_v53, %v2480_v53 }
 0x125   :  { %v1299_v18 = vadd.f32 %v1298_v10, %v1236_v4  ;;  %v1164_v19 = vadd.f32 %v1163_v9, %v2488_v0 }
 0x127   :  { %v1165_v23 = vadd.f32 %v2480_v53, %v1164_v19  ;;  %v1300_v25 = vadd.f32 %v1299_v18, %v1237_v21 }
 0x128   :  { %2253 = shalt.err (!%p2250_p4)
}
 0x129   :  { %s2254_s8 = scalar_lea.hbm %s2718_s2, 4096 }
 0x12a   :  { %p2255_p5 = scmp.ne.s32.totalorder %s2718_s2, %s2254_s8  ;;  %p2258_p6 = scmp.lt.u32.totalorder %s2254_s8, %s2718_s2 }
 0x12c   :  { %p2260_p7 = pnand %p2258_p6, %p2255_p5 }
 0x12e   :  { %2263 = shalt.err (!%p2260_p7)
}
 0x12f   :  { %s2314_s13 = smov 64   ;;  %s2315_s14 = smov 4   ;;  %v1239_v53 = vmul.f32 %v2484_v60, %v2484_v60  ;;  %v1301_v0 = vadd.f32 %v1300_v25, %v1238_v55  ;;  %v1166_v26 = vadd.f32 %v2484_v60, %v1165_v23  ;;  %v1240_v27 = vmul.f32 %v2494_v15, %v2494_v15 }
 0x130   :  { %1670 = dma.vmem_to_hbm [thread:$0]  %s1665_s30, 4096, %s2718_s2, [#allocation3], %s2314_s13, %s2314_s13, %s2315_s14   ;;  %v1241_v38 = vmul.f32 %v2500_v24, %v2500_v24  ;;  %v1242_v40 = vmul.f32 %v2492_v13, %v2492_v13  ;;  %v1243_v60 = vmul.f32 %v2496_v20, %v2496_v20  ;;  %v1245_v54 = vmul.f32 %v2512_v48, %v2512_v48 }
 0x131   :  { %v1167_v28 = vadd.f32 %v1166_v26, %v2494_v15  ;;  %v1302_v32 = vadd.f32 %v1301_v0, %v1239_v53  ;;  %v1244_v15 = vmul.f32 %v2506_v39, %v2506_v39  ;;  %v1249_v9 = vmul.f32 %v2524_v12, %v2524_v12  ;;  %s2316_s2 = smov [#allocation4]   ;;  %s2317_s18 = smov [#allocation6]  }
 0x132   :  { %v1253_v23 = vmul.f32 %v2536_v42, %v2536_v42  ;;  %s1677_s17 = sshll.u32 %s2316_s2, 4  ;;  %s1687_s19 = sshll.u32 %s2317_s18, 4  ;;  %s1678_s17 = int_to_ptr.vmem [resolvable:$true] %s1677_s17  ;;  %s2684_s19 = int_to_ptr.vmem [resolvable:$true] %s1687_s19 }
 0x133   :  { %v1303_v34 = vadd.f32 %v1302_v32, %v1240_v27  ;;  %v1168_v35 = vadd.f32 %v1167_v28, %v2500_v24  ;;  %s2264_s20 = scalar_lea.vmem %s1678_s17, 16  ;;  %s2268_s21 = scalar_lea.vmem %s1678_s17, 32 }
 0x134   :  { %p2265_p8 = scmp.ne.s32.totalorder %s1678_s17, %s2264_s20  ;;  %p2269_p9 = scmp.lt.s32.totalorder %s1678_s17, %s1678_s17 }
 0x135   :  { %v1169_v43 = vadd.f32 %v2492_v13, %v1168_v35  ;;  %v1304_v45 = vadd.f32 %v1303_v34, %v1241_v38  ;;  %v1246_v13 = vmul.f32 %v2504_v37, %v2504_v37  ;;  %v1257_v34 = vmul.f32 %v2548_v11, %v2548_v11  ;;  %p2270_p10 = scmp.lt.s32.totalorder %s2268_s21, %s2264_s20 }
 0x137   :  { %v1305_v46 = vadd.f32 %v1304_v45, %v1242_v40  ;;  %v1170_v49 = vadd.f32 %v2496_v20, %v1169_v43  ;;  %v1247_v20 = vmul.f32 %v2508_v44, %v2508_v44  ;;  %p2271_p11 = por %p2270_p10, %p2269_p9 }
 0x139   :  { %v1171_v50 = vadd.f32 %v1170_v49, %v2506_v39  ;;  %v1306_v51 = vadd.f32 %v1305_v46, %v1243_v60  ;;  %v1248_v39 = vmul.f32 %v2518_v3, %v2518_v3  ;;  %v1261_v49 = vmul.f32 %v2560_v47, %v2560_v47  ;;  %p2272_p12 = pnand %p2271_p11, %p2265_p8 }
 0x13b   :  { %v1307_v52 = vadd.f32 %v1306_v51, %v1244_v15  ;;  %v1172_v24 = vadd.f32 %v1171_v50, %v2512_v48 }
 0x13d   :  { %v1173_v56 = vadd.f32 %v2504_v37, %v1172_v24  ;;  %v1308_v57 = vadd.f32 %v1307_v52, %v1245_v54  ;;  %v1250_v37 = vmul.f32 %v2516_v1, %v2516_v1 }
 0x13f   :  { %v1309_v58 = vadd.f32 %v1308_v57, %v1246_v13  ;;  %v1174_v61 = vadd.f32 %v2508_v44, %v1173_v56  ;;  %v1251_v44 = vmul.f32 %v2520_v8, %v2520_v8  ;;  %v1265_v56 = vmul.f32 %v2575_v17, %v2575_v17 }
 0x141   :  { %v1175_v63 = vadd.f32 %v1174_v61, %v2518_v3  ;;  %v1310_v2 = vadd.f32 %v1309_v58, %v1247_v20  ;;  %v1252_v3 = vmul.f32 %v2530_v31, %v2530_v31 }
 0x143   :  { %v1311_v4 = vadd.f32 %v1310_v2, %v1248_v39  ;;  %v1176_v48 = vadd.f32 %v1175_v63, %v2524_v12 }
 0x145   :  { %v1177_v10 = vadd.f32 %v2516_v1, %v1176_v48  ;;  %v1312_v16 = vadd.f32 %v1311_v4, %v1249_v9  ;;  %v1254_v1 = vmul.f32 %v2528_v29, %v2528_v29 }
 0x147   :  { %v1313_v18 = vadd.f32 %v1312_v16, %v1250_v37  ;;  %v1178_v19 = vadd.f32 %v2520_v8, %v1177_v10  ;;  %v1255_v8 = vmul.f32 %v2532_v36, %v2532_v36  ;;  %v1131_v16 = vld [vmem:[#allocation4] sm:$0x1] }
 0x149   :  { %v1179_v21 = vadd.f32 %v1178_v19, %v2530_v31  ;;  %v1314_v22 = vadd.f32 %v1313_v18, %v1251_v44  ;;  %v1256_v31 = vmul.f32 %v2542_v62, %v2542_v62  ;;  %v1203_v18 = vld [vmem:[#allocation6] sm:$0x1] }
 0x14b   :  { %v1315_v55 = vadd.f32 %v1314_v22, %v1252_v3  ;;  %v1180_v12 = vadd.f32 %v1179_v21, %v2536_v42 }
 0x14d   :  { %v1181_v25 = vadd.f32 %v2528_v29, %v1180_v12  ;;  %v1316_v53 = vadd.f32 %v1315_v55, %v1253_v23  ;;  %v1258_v29 = vmul.f32 %v2540_v59, %v2540_v59 }
 0x14f   :  { %v1317_v0 = vadd.f32 %v1316_v53, %v1254_v1  ;;  %v1182_v26 = vadd.f32 %v2532_v36, %v1181_v25  ;;  %v1259_v36 = vmul.f32 %v2544_v6, %v2544_v6 }
 0x151   :  { %v1183_v27 = vadd.f32 %v1182_v26, %v2542_v62  ;;  %v1318_v28 = vadd.f32 %v1317_v0, %v1255_v8  ;;  %v1260_v62 = vmul.f32 %v2554_v33, %v2554_v33 }
 0x153   :  { %v1319_v32 = vadd.f32 %v1318_v28, %v1256_v31  ;;  %v1184_v42 = vadd.f32 %v1183_v27, %v2548_v11 }
 0x155   :  { %v1185_v35 = vadd.f32 %v2540_v59, %v1184_v42  ;;  %v1320_v38 = vadd.f32 %v1319_v32, %v1257_v34  ;;  %v1262_v59 = vmul.f32 %v2552_v30, %v2552_v30 }
 0x157   :  { %v1321_v40 = vadd.f32 %v1320_v38, %v1258_v29  ;;  %v1186_v43 = vadd.f32 %v2544_v6, %v1185_v35  ;;  %v1263_v6 = vmul.f32 %v2556_v41, %v2556_v41 }
 0x159   :  { %v1187_v45 = vadd.f32 %v1186_v43, %v2554_v33  ;;  %v1322_v60 = vadd.f32 %v1321_v40, %v1259_v36  ;;  %v1264_v33 = vmul.f32 %v2568_v7, %v2568_v7 }
 0x15b   :  { %v1323_v46 = vadd.f32 %v1322_v60, %v1260_v62  ;;  %v1188_v11 = vadd.f32 %v1187_v45, %v2560_v47 }
 0x15d   :  { %v1189_v15 = vadd.f32 %v2552_v30, %v1188_v11  ;;  %v1324_v50 = vadd.f32 %v1323_v46, %v1261_v49  ;;  %v1266_v30 = vmul.f32 %v2566_v5, %v2566_v5 }
 0x15f   :  { %v1325_v51 = vadd.f32 %v1324_v50, %v1262_v59  ;;  %v1190_v52 = vadd.f32 %v2556_v41, %v1189_v15  ;;  %v1267_v41 = vmul.f32 %v2571_v14, %v2571_v14 }
 0x161   :  { %v1191_v24 = vadd.f32 %v1190_v52, %v2568_v7  ;;  %v1326_v54 = vadd.f32 %v1325_v51, %v1263_v6 }
 0x163   :  { %v1327_v13 = vadd.f32 %v1326_v54, %v1264_v33  ;;  %v1192_v47 = vadd.f32 %v1191_v24, %v2575_v17 }
 0x165   :  { %v1193_v57 = vadd.f32 %v2566_v5, %v1192_v47  ;;  %v1328_v20 = vadd.f32 %v1327_v13, %v1265_v56 }
 0x167   :  { %v1194_v58 = vadd.f32 %v2571_v14, %v1193_v57  ;;  %v1329_v61 = vadd.f32 %v1328_v20, %v1266_v30 }
 0x169   :  { %v1195_v7 = vrot.slane %v1194_v58, 4  ;;  %v1330_v39 = vadd.f32 %v1329_v61, %v1267_v41 }
 0x16b   :  { %v1196_v63 = vadd.f32 %v1195_v7, %v1194_v58  ;;  %v1331_v2 = vrot.slane %v1330_v39, 4 }
 0x16d   :  { %v1197_v4 = vrot.slane %v1196_v63, 2  ;;  %v1332_v48 = vadd.f32 %v1331_v2, %v1330_v39 }
 0x16f   :  { %v1198_v9 = vadd.f32 %v1197_v4, %v1196_v63  ;;  %v1333_v17 = vrot.slane %v1332_v48, 2 }
 0x171   :  { %v1199_v37 = vrot.slane %v1198_v9, 1  ;;  %v1334_v10 = vadd.f32 %v1333_v17, %v1332_v48 }
 0x173   :  { %v1200_v5 = vadd.f32 %v1199_v37, %v1198_v9  ;;  %v1335_v44 = vrot.slane %v1334_v10, 1 }
 0x175   :  { %v1201_v14 = vadd.f32 %v1200_v5, %v1131_v16  ;;  %v1336_v19 = vadd.f32 %v1335_v44, %v1334_v10 }
 0x177   :  { %1202 = vst [vmem:[#allocation4] sm:$0x1] %v1201_v14  ;;  %v1337_v3 = vadd.f32 %v1336_v19, %v1203_v18 }
 0x178   :  { %2275 = shalt.err (!%p2272_p12)
}
 0x179   :  { %s2276_s24 = scalar_lea.hbm %s2719_s3, 16 }
 0x17a   :  { %p2277_p13 = scmp.ne.s32.totalorder %s2719_s3, %s2276_s24  ;;  %p2280_p0 = scmp.lt.u32.totalorder %s2276_s24, %s2719_s3 }
 0x17c   :  { %p2282_p1 = pnand %p2280_p0, %p2277_p13 }
 0x17e   :  { %2285 = shalt.err (!%p2282_p1)
}
 0x17f   :  { %1680 = dma.vmem_to_hbm [thread:$0]  %s1678_s17, 16, %s2719_s3, [#allocation5]   ;;  %1338 = vst [vmem:[#allocation6] sm:$0x1] %v1337_v3 }
 0x180   :  { %s2286_s0 = scalar_lea.vmem %s2684_s19, 16  ;;  %s2290_s30 = scalar_lea.vmem %s2684_s19, 32 }
 0x181   :  { %p2287_p2 = scmp.ne.s32.totalorder %s2684_s19, %s2286_s0  ;;  %p2291_p3 = scmp.lt.s32.totalorder %s2684_s19, %s2684_s19 }
 0x182   :  { %p2292_p4 = scmp.lt.s32.totalorder %s2290_s30, %s2286_s0 }
 0x184   :  { %p2293_p5 = por %p2292_p4, %p2291_p3 }
 0x186   :  { %p2294_p6 = pnand %p2293_p5, %p2287_p2 }
 0x188   :  { %2297 = shalt.err (!%p2294_p6)
}
 0x189   :  { %s2298_s7 = scalar_lea.hbm %s2720_s4, 16 }
 0x18a   :  { %p2299_p7 = scmp.ne.s32.totalorder %s2720_s4, %s2298_s7  ;;  %p2302_p8 = scmp.lt.u32.totalorder %s2298_s7, %s2720_s4 }
 0x18c   :  { %p2304_p9 = pnand %p2302_p8, %p2299_p7 }
 0x18e   :  { %2307 = shalt.err (!%p2304_p9)
}
 0x18f   :  { %1690 = dma.vmem_to_hbm [thread:$0]  %s2684_s19, 16, %s2720_s4, [#allocation5]  }
 0x190   :  { %2308 = dma.done.wait [#allocation3], 4096  }
 0x191   :  { %2309 = vsyncadd [#allocation3], 4294963200 }
 0x192   :  { %2310 = dma.done.wait [#allocation5], 32  }
 0x193   :  { %2311 = vsyncadd [#allocation5], 4294967264 }
 0x194   :  { %1700 = vsyncpa [#allocation3], 1 }
 0x195   :  { %1701 = vsyncpa [#allocation5], 1 }

</bundles_post_ra>
